<compile_context>
chip_gen: v7x
topology: tpu7x:2x2x1
jax: 0.10.0
libtpu: 0.0.40
codegen_flags: <defaults>
</compile_context>

<pallas_src>
import functools

import jax
import jax.numpy as jnp
from jax.experimental import pallas as pl
from jax.experimental.pallas import tpu as pltpu

IN_FEATURES = 320


def _linear_sigmoid_kernel(apt_ref, pep_ref, w_ref, b_ref, o_ref, *, n_apt):
    # apt_ref: (1, n_apt) VMEM, pep_ref: (1, n_pep) VMEM, w_ref: (1, 320) VMEM,
    # b_ref: (1, 1) SMEM scalar, o_ref: (1, 1) VMEM.
    w = w_ref[...]                                              # (1, 320) f32
    acc = jnp.sum(apt_ref[...] * w[:, :n_apt], axis=1, keepdims=True)   # (1, 1)
    acc = acc + jnp.sum(pep_ref[...] * w[:, n_apt:], axis=1, keepdims=True)
    z = acc + b_ref[0, 0]                                       # scalar bias from SMEM
    o_ref[...] = jax.nn.sigmoid(z).astype(o_ref.dtype)


def linear_baseline_forward(apt, pep, weight, bias):
    """Pallas implementation of LinearBaseline.forward.

    apt, pep: arrays whose total element count sums to 320 (cat order: apt then pep).
    weight:   (1, 320) float32  (same layout as torch nn.Linear(320, 1).weight)
    bias:     (1,)     float32
    returns:  (1, 1)   float32
    """
    n_apt = apt.size
    n_pep = pep.size
    assert n_apt + n_pep == IN_FEATURES, (n_apt, n_pep)

    # Contiguous reshapes only (metadata, no HBM copy); the concat happens in-kernel.
    apt_row = jnp.reshape(apt, (1, n_apt)).astype(jnp.float32)
    pep_row = jnp.reshape(pep, (1, n_pep)).astype(jnp.float32)
    w = weight.astype(jnp.float32)
    b = jnp.reshape(bias, (1, 1)).astype(jnp.float32)

    kernel = functools.partial(_linear_sigmoid_kernel, n_apt=n_apt)

    out = pl.pallas_call(
        kernel,
        out_shape=jax.ShapeDtypeStruct((1, 1), jnp.float32),
        in_specs=[
            pl.BlockSpec(memory_space=pltpu.VMEM),   # apt row (whole array)
            pl.BlockSpec(memory_space=pltpu.VMEM),   # pep row (whole array)
            pl.BlockSpec(memory_space=pltpu.VMEM),   # weight (1, 320)
            pl.BlockSpec(memory_space=pltpu.SMEM),   # bias scalar (1, 1)
        ],
        out_specs=pl.BlockSpec(memory_space=pltpu.VMEM),
    )(apt_row, pep_row, w, b)
    return out


def init_params(key):
    """Deterministic init mimicking nn.Linear(320, 1) default (U(-1/sqrt(320), 1/sqrt(320)))."""
    kw, kb = jax.random.split(key)
    bound = 1.0 / jnp.sqrt(jnp.float32(IN_FEATURES))
    weight = jax.random.uniform(kw, (1, IN_FEATURES), jnp.float32, -bound, bound)
    bias = jax.random.uniform(kb, (1,), jnp.float32, -bound, bound)
    return weight, bias


if __name__ == "__main__":
    key = jax.random.PRNGKey(0)
    k_apt, k_pep, k_params = jax.random.split(key, 3)

    # Small shapes consistent with the module: apt.numel() + pep.numel() == 320.
    apt = jax.random.normal(k_apt, (2, 4, 20), jnp.float32)   # 160 elements
    pep = jax.random.normal(k_pep, (2, 4, 20), jnp.float32)   # 160 elements

    weight, bias = init_params(k_params)

    out = linear_baseline_forward(apt, pep, weight, bias)
    out = jax.block_until_ready(out)

    # Reference check in plain JAX (matches torch: cat(apt, pep) -> fc -> sigmoid).
    x_ref = jnp.concatenate(
        [jnp.reshape(apt, (1, -1)), jnp.reshape(pep, (1, -1))], axis=1
    )
    ref = jax.nn.sigmoid(x_ref @ weight.T + bias)
    assert out.shape == (1, 1)
    assert jnp.allclose(out, ref, atol=1e-6), (out, ref)

    print("KERNEL_OK")
</pallas_src>

<mosaic_0001>
module attributes {stable_mosaic.version = 11 : i64} {
  func.func @_linear_sigmoid_kernel(%arg0: memref<1x160xf32, #tpu.memory_space<vmem>>, %arg1: memref<1x160xf32, #tpu.memory_space<vmem>>, %arg2: memref<1x320xf32, #tpu.memory_space<vmem>>, %arg3: memref<1x1xf32, #tpu.memory_space<smem>>, %arg4: memref<1x1xf32, #tpu.memory_space<vmem>>) attributes {dimension_semantics = [], scalar_prefetch = 0 : i64, scratch_operands = 0 : i64, tpu.core_type = #tpu.core_type<tc>} {
    %c0 = arith.constant 0 : index
    %c0_0 = arith.constant 0 : index
    %0 = vector.load %arg2[%c0, %c0_0] : memref<1x320xf32, #tpu.memory_space<vmem>>, vector<1x320xf32>
    %c0_1 = arith.constant 0 : index
    %c0_2 = arith.constant 0 : index
    %1 = vector.load %arg0[%c0_1, %c0_2] : memref<1x160xf32, #tpu.memory_space<vmem>>, vector<1x160xf32>
    %2 = vector.extract_strided_slice %0 {offsets = [0, 0], sizes = [1, 160], strides = [1, 1]} : vector<1x320xf32> to vector<1x160xf32>
    %3 = arith.mulf %1, %2 : vector<1x160xf32>
    %cst = arith.constant dense<0.000000e+00> : vector<1xf32>
    %4 = vector.multi_reduction <add>, %3, %cst [1] : vector<1x160xf32> to vector<1xf32>
    %5 = vector.shape_cast %4 : vector<1xf32> to vector<1x1xf32>
    %c0_3 = arith.constant 0 : index
    %c0_4 = arith.constant 0 : index
    %6 = vector.load %arg1[%c0_3, %c0_4] : memref<1x160xf32, #tpu.memory_space<vmem>>, vector<1x160xf32>
    %7 = vector.extract_strided_slice %0 {offsets = [0, 160], sizes = [1, 160], strides = [1, 1]} : vector<1x320xf32> to vector<1x160xf32>
    %8 = arith.mulf %6, %7 : vector<1x160xf32>
    %cst_5 = arith.constant dense<0.000000e+00> : vector<1xf32>
    %9 = vector.multi_reduction <add>, %8, %cst_5 [1] : vector<1x160xf32> to vector<1xf32>
    %10 = vector.shape_cast %9 : vector<1xf32> to vector<1x1xf32>
    %11 = arith.addf %5, %10 : vector<1x1xf32>
    %c0_6 = arith.constant 0 : index
    %c0_7 = arith.constant 0 : index
    %12 = memref.load %arg3[%c0_6, %c0_7] : memref<1x1xf32, #tpu.memory_space<smem>>
    %13 = vector.broadcast %12 : f32 to vector<1x1xf32>
    %14 = arith.addf %11, %13 : vector<1x1xf32>
    %15 = arith.negf %14 : vector<1x1xf32>
    %16 = math.exp %15 : vector<1x1xf32>
    %cst_8 = arith.constant 1.000000e+00 : f32
    %17 = vector.broadcast %cst_8 : f32 to vector<1x1xf32>
    %18 = arith.addf %17, %16 : vector<1x1xf32>
    %19 = arith.divf %17, %18 : vector<1x1xf32>
    %c0_9 = arith.constant 0 : index
    %c0_10 = arith.constant 0 : index
    %20 = vector.load %arg4[%c0_9, %c0_10] : memref<1x1xf32, #tpu.memory_space<vmem>>, vector<1x1xf32>
    tpu.vector_store %arg4[%c0_9, %c0_10], %19 {strides = array<i32>} : memref<1x1xf32, #tpu.memory_space<vmem>>, vector<1x1xf32>,
    return
  }
}

</mosaic_0001>

<bundles_post_ra>
// kernel: tpu_custom_call.1
= control target key start
LH: loop header
LB: loop body
LE: loop exit
PB: predicated region body
PF: predicated region fallthrough
CT: control target
= control target key end

     0   :  { %s123_s17 = smov 96   ;;  %s174_s0 = inlined_call_operand.vmem [shape: f32[1,160], index: 0, kind: input, shape index: {}]   ;;  %s175_s1 = inlined_call_operand.vmem [shape: f32[1,160], index: 1, kind: input, shape index: {}]   ;;  %s176_s2 = inlined_call_operand.vmem [shape: f32[1,320], index: 2, kind: input, shape index: {}]   ;;  %s177_s3 = inlined_call_operand.<no memory space> [shape: f32[1,1], index: 3, kind: input, shape index: {}]   ;;  %s178_s4 = inlined_call_operand.hbm [shape: f32[1,1], index: 4, kind: output, shape index: {}]  }
   0x1   :  { %v19_v0 = vld [vmem:[%s176_s2] sm:$0x7] }
   0x2   :  { %42 = vrot.lane.b32.xlu0 %v19_v0, %s123_s17 }
   0x3   :  { %10 = vsyncpa [#allocation4], 0  ;;  %v23_v1 = vlaneseq  ;;  %v20_v3 = vld [vmem:[%s174_s0] sm:$0x3]  ;;  %vm33_vm0 = vcmask 1040384   ;;  %vm35_vm1 = vcmask 253952   ;;  %v68_v25 = vstv %s177_s3 }
   0x4   :  { %v21_v6 = vmul.f32 %v20_v3, %v19_v0  ;;  %vm46_vm2 = vcmask 785408   ;;  %v40_v15 = vld [vmem:[%s175_s1] sm:$0x3]  ;;  %s124_s1 = smov [#allocation3]   ;;  %vm76_vm3 = vcmask 0  }
   0x5   :  { %v24_v2 = vshrl.u32 %v23_v1, 7  ;;  %s84_s22 = sshll.u32 %s124_s1, 4  ;;  %s85_s22 = int_to_ptr.vmem [resolvable:$true] %s84_s22 }
   0x6   :  { %s99_s23 = scalar_lea.vmem %s85_s22, 16  ;;  %s103_s24 = scalar_lea.vmem %s85_s22, 32 }
   0x7   :  { %v25_v4 = vsub.s32 0, %v24_v2  ;;  %v29_v5 = vsub.s32 1, %v24_v2  ;;  %p100_p0 = scmp.ne.s32.totalorder %s85_s22, %s99_s23  ;;  %p104_p1 = scmp.lt.s32.totalorder %s85_s22, %s85_s22 }
   0x8   :  { %p105_p2 = scmp.lt.s32.totalorder %s103_s24, %s99_s23 }
   0x9   :  { %v26_v7 = vrot.slane %v21_v6, %v25_v4  ;;  %v30_v8 = vrot.slane %v21_v6, %v29_v5 }
   0xa   :  { %p106_p3 = por %p105_p2, %p104_p1 }
   0xb   :  { %v34_v9 = vsel %vm33_vm0, %v26_v7, 0.0  ;;  %v36_v10 = vsel %vm35_vm1, %v30_v8, 0.0 }
   0xc   :  { %v37_v11 = vadd.f32 %v36_v10, %v34_v9  ;;  %p107_p4 = pnand %p106_p3, %p100_p0 }
  0x21   :  { %38 = vadd.xlane.f32.xlu0 %v37_v11 }
  0x74   :  { %v43_v12 = vpop.permute.xlu0 %42 }
  0x75   :  { %v44_v13 = vrot.slane %v43_v12, 1  ;;  %v45_v14 = vrot.slane %v43_v12, 2 }
  0x77   :  { %v47_v16 = vsel %vm46_vm2, %v44_v13, %v45_v14 }
  0x78   :  { %v49_v17 = vmul.f32 %v47_v16, %v40_v15 }
  0x7a   :  { %v54_v18 = vrot.slane %v49_v17, %v25_v4  ;;  %v58_v19 = vrot.slane %v49_v17, %v29_v5 }
  0x7c   :  { %v61_v20 = vsel %vm33_vm0, %v54_v18, 0.0  ;;  %v62_v21 = vsel %vm35_vm1, %v58_v19, 0.0 }
  0x7d   :  { %v63_v22 = vadd.f32 %v62_v21, %v61_v20 }
  0x7f   :  { %64 = vadd.xlane.f32.xlu1 %v63_v22 }
  0xae   :  { %v39_v23 = vpop.xlane.xlu0 %38 }
 0x10c   :  { %v65_v24 = vpop.xlane.xlu1 %64 }
 0x10d   :  { %v66_v26 = vadd.f32 %v65_v24, %v39_v23 }
 0x10f   :  { %v69_v27 = vadd.f32 %v68_v25, %v66_v26 }
 0x111   :  { %v92_v28 = vmul.f32 -1.442695, %v69_v27 }
 0x113   :  { %95 = vpow2.f32 %v92_v28 }
 0x11d   :  { %v96_v29 = vpop.eup %95 }
 0x11e   :  { %v73_v30 = vadd.f32 1.0, %v96_v29 }
 0x120   :  { %97 = vrcp.f32 %v73_v30 }
 0x12a   :  { %v98_v31 = vpop.eup %97 }
 0x12b   :  { %77 = vst.msk [vmem:[#allocation3] sm:$0x1] %vm76_vm3, %v98_v31 }
 0x12c   :  { %110 = shalt.err (!%p107_p4)
}
 0x12d   :  { %s111_s26 = scalar_lea.hbm %s178_s4, 16 }
 0x12e   :  { %p112_p5 = scmp.ne.s32.totalorder %s178_s4, %s111_s26  ;;  %p115_p6 = scmp.lt.u32.totalorder %s111_s26, %s178_s4 }
 0x130   :  { %p117_p7 = pnand %p115_p6, %p112_p5 }
 0x132   :  { %120 = shalt.err (!%p117_p7)
}
 0x133   :  { %87 = dma.vmem_to_hbm [thread:$0]  %s85_s22, 16, %s178_s4, [#allocation4]  }
 0x134   :  { %121 = dma.done.wait [#allocation4], 16  }
 0x135   :  { %122 = vsyncadd [#allocation4], 4294967280 }
 0x136   :  { %91 = vsyncpa [#allocation4], 1 }

</bundles_post_ra>
